<compile_context>
chip_gen: v6e
topology: v6e:2x2x1
jax: 0.10.0
libtpu: 0.0.40
codegen_flags: <defaults>
</compile_context>

<pallas_src>
import math
import functools

import jax
import jax.numpy as jnp
from jax.experimental import pallas as pl
from jax.experimental.pallas import tpu as pltpu


def _ff_kernel(x_ref, wa_ref, wg_ref, ba_ref, bg_ref, w2_ref, b2_ref,
               o_ref, acc_ref):
    k = pl.program_id(1)

    @pl.when(k == 0)
    def _():
        acc_ref[...] = jnp.zeros_like(acc_ref)

    x = x_ref[...]
    # First linear, split into value / gate column tiles of the hidden dim.
    a = jnp.dot(x, wa_ref[...], preferred_element_type=jnp.float32) + ba_ref[...]
    g = jnp.dot(x, wg_ref[...], preferred_element_type=jnp.float32) + bg_ref[...]
    # Exact (erf-based) GELU, matching torch.nn.functional.gelu default.
    # (On v5e, jax.nn.gelu(approximate=True) trades exactness for EUP offload.)
    gelu_g = 0.5 * g * (1.0 + jax.lax.erf(g * (1.0 / math.sqrt(2.0))))
    mid = (a * gelu_g).astype(w2_ref.dtype)
    # Second linear: accumulate partial (tm, D) contribution of this hidden tile.
    acc_ref[...] += jnp.dot(mid, w2_ref[...], preferred_element_type=jnp.float32)

    @pl.when(k == pl.num_programs(1) - 1)
    def _():
        # Dropout(p=0.0) is the identity (eval semantics). Add b2 once here.
        o_ref[...] = (acc_ref[...] + b2_ref[...]).astype(o_ref.dtype)


@functools.partial(jax.jit, static_argnames=("tm", "th"))
def feed_forward_pallas(x, w1, b1, w2, b2, *, tm=256, th=512):
    """x: (B, S, D); w1: (D, 2*H); b1: (2*H,); w2: (H, D); b2: (D,), H = D*mult."""
    B, S, D = x.shape
    M = B * S
    two_hidden = w1.shape[1]
    H = two_hidden // 2

    # Clamp tiles to the problem size (kept as multiples of 8 / 128 by the asserts).
    tm = min(tm, M)
    th = min(th, H)
    assert M % tm == 0, "batch*seq must be divisible by the row tile"
    assert H % th == 0, "hidden dim must be divisible by the hidden tile"
    assert tm % 8 == 0 and D % 128 == 0 and th % 128 == 0, (
        "tile shapes must respect the (8,128) layout for lane-dense stores")

    x2 = x.reshape(M, D)
    # Split W1/b1 into value (a) and gate (g) halves in the wrapper (cheap XLA slice).
    wa = w1[:, :H]
    wg = w1[:, H:]
    ba = b1[:H].reshape(1, H)
    bg = b1[H:].reshape(1, H)
    b2_2d = b2.reshape(1, D)

    cost = pl.CostEstimate(
        flops=6 * M * D * H,                     # 4*M*D*H (first) + 2*M*H*D (second)
        transcendentals=M * H,                   # one erf per gated activation
        bytes_accessed=(x2.size + w1.size + w2.size + b1.size + b2.size + M * D)
        * x.dtype.itemsize,
    )

    out = pl.pallas_call(
        _ff_kernel,
        out_shape=jax.ShapeDtypeStruct((M, D), x.dtype),
        grid_spec=pltpu.PrefetchScalarGridSpec(
            num_scalar_prefetch=0,
            grid=(M // tm, H // th),
            in_specs=[
                pl.BlockSpec((tm, D), lambda i, k: (i, 0)),   # x row tile
                pl.BlockSpec((D, th), lambda i, k: (0, k)),   # Wa column tile
                pl.BlockSpec((D, th), lambda i, k: (0, k)),   # Wg column tile
                pl.BlockSpec((1, th), lambda i, k: (0, k)),   # b_a tile
                pl.BlockSpec((1, th), lambda i, k: (0, k)),   # b_g tile
                pl.BlockSpec((th, D), lambda i, k: (k, 0)),   # W2 row tile
                pl.BlockSpec((1, D), lambda i, k: (0, 0)),    # b2 (epilogue only)
            ],
            out_specs=pl.BlockSpec((tm, D), lambda i, k: (i, 0)),
            scratch_shapes=[pltpu.VMEM((tm, D), jnp.float32)],
        ),
        compiler_params=pltpu.CompilerParams(
            dimension_semantics=("parallel", "arbitrary"),
        ),
        cost_estimate=cost,
    )(x2, wa, wg, ba, bg, w2, b2_2d)
    return out.reshape(B, S, D)


def feed_forward_ref(x, w1, b1, w2, b2):
    h = jnp.einsum("bsd,de->bse", x, w1) + b1
    a, g = jnp.split(h, 2, axis=-1)
    mid = a * jax.nn.gelu(g, approximate=False)
    return jnp.einsum("bsh,hd->bsd", mid, w2) + b2


if __name__ == "__main__":
    key = jax.random.PRNGKey(0)
    # Small but layout-friendly shapes: D and H multiples of 128, M = B*S = 128.
    B, S, dim, mult = 2, 64, 128, 2
    hidden = dim * mult

    k_x, k_w1, k_b1, k_w2, k_b2 = jax.random.split(key, 5)
    x = jax.random.normal(k_x, (B, S, dim), dtype=jnp.float32)

    # Deterministic param init (PyTorch Linear-style uniform bounds).
    lim1 = 1.0 / math.sqrt(dim)
    w1 = jax.random.uniform(k_w1, (dim, hidden * 2), minval=-lim1, maxval=lim1,
                            dtype=jnp.float32)
    b1 = jax.random.uniform(k_b1, (hidden * 2,), minval=-lim1, maxval=lim1,
                            dtype=jnp.float32)
    lim2 = 1.0 / math.sqrt(hidden)
    w2 = jax.random.uniform(k_w2, (hidden, dim), minval=-lim2, maxval=lim2,
                            dtype=jnp.float32)
    b2 = jax.random.uniform(k_b2, (dim,), minval=-lim2, maxval=lim2,
                            dtype=jnp.float32)

    # th=128 so the hidden-reduction grid axis (and the accumulator path) is exercised.
    out = feed_forward_pallas(x, w1, b1, w2, b2, tm=128, th=128)
    out = jax.block_until_ready(out)

    ref = feed_forward_ref(x, w1, b1, w2, b2)
    assert out.shape == (B, S, dim)
    assert jnp.allclose(out, ref, atol=1e-4, rtol=1e-4), "mismatch vs reference"

    print("KERNEL_OK")
</pallas_src>

<mosaic_0001>
module attributes {stable_mosaic.version = 11 : i64} {
  func.func @_ff_kernel(%arg0: i32, %arg1: i32, %arg2: memref<128x128xf32, #tpu.memory_space<vmem>>, %arg3: memref<128x128xf32, #tpu.memory_space<vmem>>, %arg4: memref<128x128xf32, #tpu.memory_space<vmem>>, %arg5: memref<1x128xf32, #tpu.memory_space<vmem>>, %arg6: memref<1x128xf32, #tpu.memory_space<vmem>>, %arg7: memref<128x128xf32, #tpu.memory_space<vmem>>, %arg8: memref<1x128xf32, #tpu.memory_space<vmem>>, %arg9: memref<128x128xf32, #tpu.memory_space<vmem>>, %arg10: memref<128x128xf32, #tpu.memory_space<vmem>>) attributes {dimension_semantics = [#tpu.dimension_semantics<parallel>, #tpu.dimension_semantics<arbitrary>], iteration_bounds = array<i64: 1, 2>, scalar_prefetch = 0 : i64, scratch_operands = 1 : i64, tpu.core_type = #tpu.core_type<tc>, window_params = [{transform_indices = @transform_0, window_bounds = array<i64: 128, 128>}, {transform_indices = @transform_1, window_bounds = array<i64: 128, 128>}, {transform_indices = @transform_2, window_bounds = array<i64: 128, 128>}, {transform_indices = @transform_3, window_bounds = array<i64: 1, 128>}, {transform_indices = @transform_4, window_bounds = array<i64: 1, 128>}, {transform_indices = @transform_5, window_bounds = array<i64: 128, 128>}, {pipeline_mode = #tpu.pipeline_mode<synchronous>, transform_indices = @transform_6, window_bounds = array<i64: 1, 128>}, {transform_indices = @transform_7, window_bounds = array<i64: 128, 128>}]} {
    %c0_i32 = arith.constant 0 : i32
    %0 = arith.cmpi eq, %arg1, %c0_i32 : i32
    %1 = arith.extui %0 : i1 to i32
    %c0_i32_0 = arith.constant 0 : i32
    %2 = arith.cmpi ne, %1, %c0_i32_0 : i32
    scf.if %2 {
      %cst_22 = arith.constant 0.000000e+00 : f32
      %31 = vector.broadcast %cst_22 : f32 to vector<128x128xf32>
      %c0_23 = arith.constant 0 : index
      %c0_24 = arith.constant 0 : index
      %32 = vector.load %arg10[%c0_23, %c0_24] : memref<128x128xf32, #tpu.memory_space<vmem>>, vector<128x128xf32>
      tpu.vector_store %arg10[%c0_23, %c0_24], %31 {strides = array<i32>} : memref<128x128xf32, #tpu.memory_space<vmem>>, vector<128x128xf32>,
    } else {
    }
    %c0 = arith.constant 0 : index
    %c0_1 = arith.constant 0 : index
    %3 = vector.load %arg2[%c0, %c0_1] : memref<128x128xf32, #tpu.memory_space<vmem>>, vector<128x128xf32>
    %c0_2 = arith.constant 0 : index
    %c0_3 = arith.constant 0 : index
    %4 = vector.load %arg3[%c0_2, %c0_3] : memref<128x128xf32, #tpu.memory_space<vmem>>, vector<128x128xf32>
    %cst = arith.constant dense<0.000000e+00> : vector<128x128xf32>
    %5 = tpu.matmul %3, %4, %cst {dimension_numbers = #tpu.dot_dimension_numbers<[1], [0], [0], [1], [0, 0, 1, 1], [], []>} : vector<128x128xf32>, vector<128x128xf32>, vector<128x128xf32> -> vector<128x128xf32>
    %c0_4 = arith.constant 0 : index
    %c0_5 = arith.constant 0 : index
    %6 = vector.load %arg5[%c0_4, %c0_5] : memref<1x128xf32, #tpu.memory_space<vmem>>, vector<1x128xf32>
    %7 = vector.broadcast %6 : vector<1x128xf32> to vector<128x128xf32>
    %8 = arith.addf %5, %7 : vector<128x128xf32>
    %c0_6 = arith.constant 0 : index
    %c0_7 = arith.constant 0 : index
    %9 = vector.load %arg4[%c0_6, %c0_7] : memref<128x128xf32, #tpu.memory_space<vmem>>, vector<128x128xf32>
    %cst_8 = arith.constant dense<0.000000e+00> : vector<128x128xf32>
    %10 = tpu.matmul %3, %9, %cst_8 {dimension_numbers = #tpu.dot_dimension_numbers<[1], [0], [0], [1], [0, 0, 1, 1], [], []>} : vector<128x128xf32>, vector<128x128xf32>, vector<128x128xf32> -> vector<128x128xf32>
    %c0_9 = arith.constant 0 : index
    %c0_10 = arith.constant 0 : index
    %11 = vector.load %arg6[%c0_9, %c0_10] : memref<1x128xf32, #tpu.memory_space<vmem>>, vector<1x128xf32>
    %12 = vector.broadcast %11 : vector<1x128xf32> to vector<128x128xf32>
    %13 = arith.addf %10, %12 : vector<128x128xf32>
    %cst_11 = arith.constant 5.000000e-01 : f32
    %14 = vector.broadcast %cst_11 : f32 to vector<128x128xf32>
    %15 = arith.mulf %14, %13 : vector<128x128xf32>
    %cst_12 = arith.constant 0.707106769 : f32
    %16 = vector.broadcast %cst_12 : f32 to vector<128x128xf32>
    %17 = arith.mulf %13, %16 : vector<128x128xf32>
    %18 = math.erf %17 : vector<128x128xf32>
    %cst_13 = arith.constant 1.000000e+00 : f32
    %19 = vector.broadcast %cst_13 : f32 to vector<128x128xf32>
    %20 = arith.addf %19, %18 : vector<128x128xf32>
    %21 = arith.mulf %15, %20 : vector<128x128xf32>
    %22 = arith.mulf %8, %21 : vector<128x128xf32>
    %c0_14 = arith.constant 0 : index
    %c0_15 = arith.constant 0 : index
    %23 = vector.load %arg10[%c0_14, %c0_15] : memref<128x128xf32, #tpu.memory_space<vmem>>, vector<128x128xf32>
    %c0_16 = arith.constant 0 : index
    %c0_17 = arith.constant 0 : index
    %24 = vector.load %arg7[%c0_16, %c0_17] : memref<128x128xf32, #tpu.memory_space<vmem>>, vector<128x128xf32>
    %cst_18 = arith.constant dense<0.000000e+00> : vector<128x128xf32>
    %25 = tpu.matmul %22, %24, %cst_18 {dimension_numbers = #tpu.dot_dimension_numbers<[1], [0], [0], [1], [0, 0, 1, 1], [], []>} : vector<128x128xf32>, vector<128x128xf32>, vector<128x128xf32> -> vector<128x128xf32>
    %26 = arith.addf %23, %25 : vector<128x128xf32>
    %c0_19 = arith.constant 0 : index
    %c0_20 = arith.constant 0 : index
    %27 = vector.load %arg10[%c0_19, %c0_20] : memref<128x128xf32, #tpu.memory_space<vmem>>, vector<128x128xf32>
    tpu.vector_store %arg10[%c0_19, %c0_20], %26 {strides = array<i32>} : memref<128x128xf32, #tpu.memory_space<vmem>>, vector<128x128xf32>,
    %c1_i32 = arith.constant 1 : i32
    %28 = arith.cmpi eq, %arg1, %c1_i32 : i32
    %29 = arith.extui %28 : i1 to i32
    %c0_i32_21 = arith.constant 0 : i32
    %30 = arith.cmpi ne, %29, %c0_i32_21 : i32
    scf.if %30 {
      %c0_22 = arith.constant 0 : index
      %c0_23 = arith.constant 0 : index
      %31 = vector.load %arg10[%c0_22, %c0_23] : memref<128x128xf32, #tpu.memory_space<vmem>>, vector<128x128xf32>
      %c0_24 = arith.constant 0 : index
      %c0_25 = arith.constant 0 : index
      %32 = vector.load %arg8[%c0_24, %c0_25] : memref<1x128xf32, #tpu.memory_space<vmem>>, vector<1x128xf32>
      %33 = vector.broadcast %32 : vector<1x128xf32> to vector<128x128xf32>
      %34 = arith.addf %31, %33 : vector<128x128xf32>
      %c0_26 = arith.constant 0 : index
      %c0_27 = arith.constant 0 : index
      %35 = vector.load %arg9[%c0_26, %c0_27] : memref<128x128xf32, #tpu.memory_space<vmem>>, vector<128x128xf32>
      tpu.vector_store %arg9[%c0_26, %c0_27], %34 {strides = array<i32>} : memref<128x128xf32, #tpu.memory_space<vmem>>, vector<128x128xf32>,
    } else {
    }
    return
  }
  func.func @transform_0(%arg0: i32, %arg1: i32) -> (i32, i32) {
    %c0_i32 = arith.constant 0 : i32
    %c0_i32_0 = arith.constant 0 : i32
    return %arg0, %c0_i32 : i32, i32
  }
  func.func @transform_1(%arg0: i32, %arg1: i32) -> (i32, i32) {
    %c0_i32 = arith.constant 0 : i32
    %c0_i32_0 = arith.constant 0 : i32
    return %c0_i32, %arg1 : i32, i32
  }
  func.func @transform_2(%arg0: i32, %arg1: i32) -> (i32, i32) {
    %c0_i32 = arith.constant 0 : i32
    %c0_i32_0 = arith.constant 0 : i32
    return %c0_i32, %arg1 : i32, i32
  }
  func.func @transform_3(%arg0: i32, %arg1: i32) -> (i32, i32) {
    %c0_i32 = arith.constant 0 : i32
    %c0_i32_0 = arith.constant 0 : i32
    return %c0_i32, %arg1 : i32, i32
  }
  func.func @transform_4(%arg0: i32, %arg1: i32) -> (i32, i32) {
    %c0_i32 = arith.constant 0 : i32
    %c0_i32_0 = arith.constant 0 : i32
    return %c0_i32, %arg1 : i32, i32
  }
  func.func @transform_5(%arg0: i32, %arg1: i32) -> (i32, i32) {
    %c0_i32 = arith.constant 0 : i32
    %c0_i32_0 = arith.constant 0 : i32
    return %arg1, %c0_i32 : i32, i32
  }
  func.func @transform_6(%arg0: i32, %arg1: i32) -> (i32, i32) {
    %c0_i32 = arith.constant 0 : i32
    %c0_i32_0 = arith.constant 0 : i32
    %c0_i32_1 = arith.constant 0 : i32
    return %c0_i32, %c0_i32_0 : i32, i32
  }
  func.func @transform_7(%arg0: i32, %arg1: i32) -> (i32, i32) {
    %c0_i32 = arith.constant 0 : i32
    %c0_i32_0 = arith.constant 0 : i32
    return %arg0, %c0_i32 : i32, i32
  }
}

</mosaic_0001>

<bundles_post_ra>
// kernel: feed_forward_pallas.1
= control target key start
LH: loop header
LB: loop body
LE: loop exit
PB: predicated region body
PF: predicated region fallthrough
CT: control target
= control target key end

     0   :  { %12 = vsyncpa [#allocation6], 0  ;;  %s1944_s24 = smov 0   ;;  %s1946_s25 = smov 0   ;;  %s2307_s0 = inlined_call_operand.vmem [shape: f32[128,128], index: 0, kind: input, shape index: {}]   ;;  %s2308_s1 = inlined_call_operand.vmem [shape: f32[128,256], index: 1, kind: input, shape index: {}]   ;;  %s2309_s2 = inlined_call_operand.vmem [shape: f32[128,256], index: 2, kind: input, shape index: {}]   ;;  %s2310_s3 = inlined_call_operand.vmem [shape: f32[1,256], index: 3, kind: input, shape index: {}]   ;;  %s2311_s4 = inlined_call_operand.vmem [shape: f32[1,256], index: 4, kind: input, shape index: {}]   ;;  %s2312_s5 = inlined_call_operand.vmem [shape: f32[256,128], index: 5, kind: input, shape index: {}]   ;;  %s2313_s6 = inlined_call_operand.vmem [shape: f32[1,128], index: 6, kind: input, shape index: {}]   ;;  %s2314_s7 = inlined_call_operand.hbm [shape: f32[128,128], index: 7, kind: output, shape index: {}]  }
   0x1   :  { %s1948_s26 = smov 0   ;;  %s1950_s27 = smov 0  }
   0x2   :  { %s1952_s28 = smov 0  }
   0x3 LB: > { %s1432_s29 = sadd.s32 4294967295, %s1898_s28   ;;  %s27_s30 = sadd.s32 1, %s1894_s27  ;;  %s1898_s28 = sphi %s1952_s28, %s18_s28   ;;  %s1894_s27 = sphi %s1950_s27, %s2320_s27   ;;  %s1890_s26 = sphi %s1948_s26, %s2319_s26   ;;  %s1886_s25 = sphi %s1946_s25, %s2318_s25   ;;  %s1882_s24 = sphi %s1944_s24, %s2317_s24  }
   0x4   : > { %p28_p0 = scmp.ge.s32.totalorder %s27_s30, 2  ;;  %p70_p1 = scmp.ne.s32.totalorder %s1886_s25, %s1882_s24 }
   0x5   : > { %p71_p2 = scmp.eq.s32.totalorder %s1898_s28, 0  ;;  %s63_s10 = sadd.s32 1, %s1886_s25 }
   0x6   : > { %s2322_s30 = smov (%p28_p0, %s27_s30), 0  ;;  %p1435_p5 = scmp.ge.s32.totalorder %s1898_s28, 2 }
   0x7   : > { %p1976_p3 = por %p71_p2, %p70_p1  ;;  %s60_s9 = ssub.s32 %s1894_s27, %s2322_s30 }
   0x8   : > { %p61_p4 = scmp.eq.s32.totalorder %s60_s9, 0  ;;  %259 = sbr.rel (%p1435_p5) target bundleno = 37 (0x25), region = 24 }
   0xa   : > { %s1984_s11 = scalar_select %p61_p4, %s1886_s25, %s63_s10  }
   0xd   : > { %262 = sbr.rel (!%p1976_p3) target bundleno = 25 (0x19), region = 28  ;;  %s264_s12 = sand.u32 (%p1976_p3), 1, %s1886_s25  }
   0xe   : > { %s1437_s13 = sshll.u32 (%p1976_p3), %s1894_s27, 3  ;;  %s1436_s14 = sshll.u32 (%p1976_p3), %s264_s12, 7 }
   0xf   : > { %s1994_s17 = scalar_lea.vmem (%p1976_p3), %s2308_s1, %s1437_s13  ;;  %s266_s18 = scalar_lea.vmem (%p1976_p3), [#allocation3], %s1436_s14 }
  0x10   : > { %v327_v0 = vld [vmem:[%s1994_s17] sm:$0xff] (%p1976_p3)  ;;  %v329_v1 = vld [vmem:[%s1994_s17 + $0x10] sm:$0xff] (%p1976_p3) }
  0x11   : > { %v331_v2 = vld [vmem:[%s1994_s17 + $0x20] sm:$0xff] (%p1976_p3)  ;;  %328 = vst [vmem:[%s266_s18] sm:$0xff] (%p1976_p3), %v327_v0  ;;  %330 = vst [vmem:[%s266_s18 + $0x8] sm:$0xff] (%p1976_p3), %v329_v1  ;;  %v333_v3 = vld [vmem:[%s1994_s17 + $0x30] sm:$0xff] (%p1976_p3) }
  0x12   : > { %332 = vst [vmem:[%s266_s18 + $0x10] sm:$0xff] %v331_v2  ;;  %v335_v4 = vld [vmem:[%s1994_s17 + $0x40] sm:$0xff]  ;;  %v337_v5 = vld [vmem:[%s1994_s17 + $0x50] sm:$0xff]  ;;  %334 = vst [vmem:[%s266_s18 + $0x18] sm:$0xff] %v333_v3 }
  0x13   : > { %336 = vst [vmem:[%s266_s18 + $0x20] sm:$0xff] %v335_v4  ;;  %338 = vst [vmem:[%s266_s18 + $0x28] sm:$0xff] %v337_v5  ;;  %v339_v6 = vld [vmem:[%s1994_s17 + $0x60] sm:$0xff]  ;;  %v341_v7 = vld [vmem:[%s1994_s17 + $0x70] sm:$0xff] }
  0x14   : > { %v343_v8 = vld [vmem:[%s1994_s17 + $0x80] sm:$0xff]  ;;  %340 = vst [vmem:[%s266_s18 + $0x30] sm:$0xff] %v339_v6  ;;  %342 = vst [vmem:[%s266_s18 + $0x38] sm:$0xff] %v341_v7  ;;  %v345_v9 = vld [vmem:[%s1994_s17 + $0x90] sm:$0xff] }
  0x15   : > { %344 = vst [vmem:[%s266_s18 + $0x40] sm:$0xff] %v343_v8  ;;  %v347_v10 = vld [vmem:[%s1994_s17 + $0xa0] sm:$0xff]  ;;  %v349_v11 = vld [vmem:[%s1994_s17 + $0xb0] sm:$0xff]  ;;  %346 = vst [vmem:[%s266_s18 + $0x48] sm:$0xff] %v345_v9 }
  0x16   : > { %348 = vst [vmem:[%s266_s18 + $0x50] sm:$0xff] %v347_v10  ;;  %350 = vst [vmem:[%s266_s18 + $0x58] sm:$0xff] %v349_v11  ;;  %v351_v12 = vld [vmem:[%s1994_s17 + $0xc0] sm:$0xff]  ;;  %v353_v13 = vld [vmem:[%s1994_s17 + $0xd0] sm:$0xff] }
  0x17   : > { %v355_v14 = vld [vmem:[%s1994_s17 + $0xe0] sm:$0xff]  ;;  %352 = vst [vmem:[%s266_s18 + $0x60] sm:$0xff] %v351_v12  ;;  %354 = vst [vmem:[%s266_s18 + $0x68] sm:$0xff] %v353_v13  ;;  %v357_v15 = vld [vmem:[%s1994_s17 + $0xf0] sm:$0xff] }
  0x18   : > { %356 = vst [vmem:[%s266_s18 + $0x70] sm:$0xff] %v355_v14  ;;  %358 = vst [vmem:[%s266_s18 + $0x78] sm:$0xff] %v357_v15 }
  0x19 PF: > { %364 = sbr.rel (!%p1976_p3) target bundleno = 37 (0x25), region = 66  ;;  %s366_s19 = sand.u32 (%p1976_p3), 1, %s1886_s25  }
  0x1a   : > { %s1439_s20 = sshll.u32 (%p1976_p3), %s1894_s27, 3  ;;  %s1438_s21 = sshll.u32 (%p1976_p3), %s366_s19, 7 }
  0x1b   : > { %s2019_s9 = scalar_lea.vmem (%p1976_p3), %s2309_s2, %s1439_s20  ;;  %s368_s8 = scalar_lea.vmem (%p1976_p3), [#allocation4], %s1438_s21 }
  0x1c   : > { %v429_v16 = vld [vmem:[%s2019_s9] sm:$0xff] (%p1976_p3)  ;;  %v431_v17 = vld [vmem:[%s2019_s9 + $0x10] sm:$0xff] (%p1976_p3) }
  0x1d   : > { %v433_v18 = vld [vmem:[%s2019_s9 + $0x20] sm:$0xff] (%p1976_p3)  ;;  %430 = vst [vmem:[%s368_s8] sm:$0xff] (%p1976_p3), %v429_v16  ;;  %432 = vst [vmem:[%s368_s8 + $0x8] sm:$0xff] (%p1976_p3), %v431_v17  ;;  %v435_v19 = vld [vmem:[%s2019_s9 + $0x30] sm:$0xff] (%p1976_p3) }
  0x1e   : > { %434 = vst [vmem:[%s368_s8 + $0x10] sm:$0xff] %v433_v18  ;;  %v437_v20 = vld [vmem:[%s2019_s9 + $0x40] sm:$0xff]  ;;  %v439_v21 = vld [vmem:[%s2019_s9 + $0x50] sm:$0xff]  ;;  %436 = vst [vmem:[%s368_s8 + $0x18] sm:$0xff] %v435_v19 }
  0x1f   : > { %438 = vst [vmem:[%s368_s8 + $0x20] sm:$0xff] %v437_v20  ;;  %440 = vst [vmem:[%s368_s8 + $0x28] sm:$0xff] %v439_v21  ;;  %v441_v22 = vld [vmem:[%s2019_s9 + $0x60] sm:$0xff]  ;;  %v443_v23 = vld [vmem:[%s2019_s9 + $0x70] sm:$0xff] }
  0x20   : > { %v445_v24 = vld [vmem:[%s2019_s9 + $0x80] sm:$0xff]  ;;  %442 = vst [vmem:[%s368_s8 + $0x30] sm:$0xff] %v441_v22  ;;  %444 = vst [vmem:[%s368_s8 + $0x38] sm:$0xff] %v443_v23  ;;  %v447_v25 = vld [vmem:[%s2019_s9 + $0x90] sm:$0xff] }
  0x21   : > { %446 = vst [vmem:[%s368_s8 + $0x40] sm:$0xff] %v445_v24  ;;  %v449_v26 = vld [vmem:[%s2019_s9 + $0xa0] sm:$0xff]  ;;  %v451_v27 = vld [vmem:[%s2019_s9 + $0xb0] sm:$0xff]  ;;  %448 = vst [vmem:[%s368_s8 + $0x48] sm:$0xff] %v447_v25 }
  0x22   : > { %450 = vst [vmem:[%s368_s8 + $0x50] sm:$0xff] %v449_v26  ;;  %452 = vst [vmem:[%s368_s8 + $0x58] sm:$0xff] %v451_v27  ;;  %v453_v28 = vld [vmem:[%s2019_s9 + $0xc0] sm:$0xff]  ;;  %v455_v29 = vld [vmem:[%s2019_s9 + $0xd0] sm:$0xff] }
  0x23   : > { %v457_v30 = vld [vmem:[%s2019_s9 + $0xe0] sm:$0xff]  ;;  %454 = vst [vmem:[%s368_s8 + $0x60] sm:$0xff] %v453_v28  ;;  %456 = vst [vmem:[%s368_s8 + $0x68] sm:$0xff] %v455_v29  ;;  %v459_v31 = vld [vmem:[%s2019_s9 + $0xf0] sm:$0xff] }
  0x24   : > { %458 = vst [vmem:[%s368_s8 + $0x70] sm:$0xff] %v457_v30  ;;  %460 = vst [vmem:[%s368_s8 + $0x78] sm:$0xff] %v459_v31 }
  0x25 PF: > { %p1440_p6 = scmp.ge.s32.totalorder %s1898_s28, 1  ;;  %p486_p7 = scmp.lt.s32.totalorder %s1898_s28, 3 }
  0x27   : > { %p487_p8 = pnand %p1440_p6, %p486_p7 }
  0x28   : > { %s493_s10 = sand.u32 (!%p487_p8), 1, %s1882_s24   ;;  %p552_p9 = scmp.lt.s32.totalorder (!%p487_p8), %s1890_s26, 1 }
  0x29   : > { %490 = sbr.rel (%p487_p8) target bundleno = 568 (0x238), region = 116  ;;  %s1441_s12 = sshll.u32 (!%p487_p8), %s493_s10, 7 }
  0x2a   : > { %s1443_s13 = sshll.u32 (!%p487_p8), %s1890_s26, 4  ;;  %s2058_s9 = scalar_lea.vmem (!%p487_p8), [#allocation3], %s1441_s12 }
  0x2b   : > { %p559_p10 = scmp.lt.s32.totalorder (!%p487_p8), %s1443_s13, 31  ;;  %s2060_s8 = scalar_lea.vmem (!%p487_p8), [#allocation4], %s1441_s12 }
  0x2c   : > { %p1445_p11 = scmp.ne.s32.totalorder (!%p487_p8), %s1890_s26, 0 }
  0x2e   : > { %s2043_s14 = scalar_select %p552_p9, %s1890_s26, 1 }
  0x2f   : > { %s2324_s13 = smov (!%p559_p10, %s1443_s13), 31  ;;  %568 = sbr.rel (%p1445_p11) target bundleno = 61 (0x3d), region = 128 }
  0x30   : > { %s554_s17 = scalar_lea.vmem %s2310_s3, %s2043_s14  ;;  %s557_s20 = scalar_lea.vmem %s2311_s4, %s2043_s14 }
  0x31   : > { %s1444_s21 = sshll.u32 %s2324_s13, 3 }
  0x32   : > { %s2056_s23 = scalar_lea.vmem %s2312_s5, %s1444_s21 }
  0x34   : > { %v1900_v32 = vmov 0.0  }
  0x35   : > { %569 = vst [vmem:[#allocation2 + $0x30] sm:$0xff] %v1900_v32  ;;  %570 = vst [vmem:[#allocation2] sm:$0xff] %v1900_v32 }
  0x36   : > { %571 = vst [vmem:[#allocation2 + $0x58] sm:$0xff] %v1900_v32  ;;  %572 = vst [vmem:[#allocation2 + $0x18] sm:$0xff] %v1900_v32 }
  0x37   : > { %573 = vst [vmem:[#allocation2 + $0x50] sm:$0xff] %v1900_v32  ;;  %574 = vst [vmem:[#allocation2 + $0x68] sm:$0xff] %v1900_v32 }
  0x38   : > { %575 = vst [vmem:[#allocation2 + $0x8] sm:$0xff] %v1900_v32  ;;  %576 = vst [vmem:[#allocation2 + $0x48] sm:$0xff] %v1900_v32 }
  0x39   : > { %577 = vst [vmem:[#allocation2 + $0x40] sm:$0xff] %v1900_v32  ;;  %578 = vst [vmem:[#allocation2 + $0x20] sm:$0xff] %v1900_v32 }
  0x3a   : > { %579 = vst [vmem:[#allocation2 + $0x10] sm:$0xff] %v1900_v32  ;;  %580 = vst [vmem:[#allocation2 + $0x38] sm:$0xff] %v1900_v32 }
  0x3b   : > { %581 = vst [vmem:[#allocation2 + $0x60] sm:$0xff] %v1900_v32  ;;  %582 = vst [vmem:[#allocation2 + $0x70] sm:$0xff] %v1900_v32 }
  0x3c   : > { %583 = vst [vmem:[#allocation2 + $0x78] sm:$0xff] %v1900_v32  ;;  %584 = vst [vmem:[#allocation2 + $0x28] sm:$0xff] %v1900_v32 }
  0x3d PF: > { %v784_v33 = vld [vmem:[%s2060_s8 + $0x78] sm:$0xff]  ;;  %v783_v34 = vld [vmem:[%s2060_s8 + $0x70] sm:$0xff]  ;;  %v782_v35 = vld [vmem:[%s2060_s8 + $0x68] sm:$0xff]  ;;  %p1448_p12 = scmp.ne.s32.totalorder %s1890_s26, 1 }
  0x3e   : > { %1606 = vmatprep.subr.mxu1 %v784_v33  ;;  %v616_v36 = vld [vmem:[%s2058_s9 + $0x78] sm:$0xff]  ;;  %v615_v37 = vld [vmem:[%s2058_s9 + $0x70] sm:$0xff]  ;;  %v781_v38 = vld [vmem:[%s2060_s8 + $0x60] sm:$0xff] }
  0x3f   : > { %1607 = vmatpush3.msra.mxu1 %v784_v33  ;;  %1550 = vmatprep.subr.mxu0 %v616_v36  ;;  %v614_v39 = vld [vmem:[%s2058_s9 + $0x68] sm:$0xff]  ;;  %v780_v40 = vld [vmem:[%s2060_s8 + $0x58] sm:$0xff]  ;;  %v613_v41 = vld [vmem:[%s2058_s9 + $0x60] sm:$0xff] }
  0x40   : > { %1608 = vmatprep.subr.mxu1 %v783_v34  ;;  %1551 = vmatpush3.msra.mxu0 %v616_v36  ;;  %v779_v42 = vld [vmem:[%s2060_s8 + $0x50] sm:$0xff]  ;;  %v612_v43 = vld [vmem:[%s2058_s9 + $0x58] sm:$0xff]  ;;  %v778_v44 = vld [vmem:[%s2060_s8 + $0x48] sm:$0xff] }
  0x41   : > { %1609 = vmatpush3.msra.mxu1 %v783_v34  ;;  %1552 = vmatprep.subr.mxu0 %v615_v37  ;;  %v611_v45 = vld [vmem:[%s2058_s9 + $0x50] sm:$0xff]  ;;  %v777_v46 = vld [vmem:[%s2060_s8 + $0x40] sm:$0xff]  ;;  %v610_v47 = vld [vmem:[%s2058_s9 + $0x48] sm:$0xff] }
  0x42   : > { %1610 = vmatprep.subr.mxu1 %v782_v35  ;;  %1553 = vmatpush3.msra.mxu0 %v615_v37  ;;  %v776_v48 = vld [vmem:[%s2060_s8 + $0x38] sm:$0xff]  ;;  %v585_v49 = vld [vmem:[%s2307_s0] sm:$0xff]  ;;  %v775_v50 = vld [vmem:[%s2060_s8 + $0x30] sm:$0xff] }
  0x43   : > { %1611 = vmatpush3.msra.mxu1 %v782_v35  ;;  %1554 = vmatprep.subr.mxu0 %v614_v39  ;;  %v609_v51 = vld [vmem:[%s2058_s9 + $0x40] sm:$0xff]  ;;  %v774_v52 = vld [vmem:[%s2060_s8 + $0x28] sm:$0xff]  ;;  %v608_v53 = vld [vmem:[%s2058_s9 + $0x38] sm:$0xff] }
  0x44   : > { %1612 = vmatprep.subr.mxu1 %v781_v38  ;;  %1555 = vmatpush3.msra.mxu0 %v614_v39  ;;  %v773_v54 = vld [vmem:[%s2060_s8 + $0x20] sm:$0xff]  ;;  %v607_v55 = vld [vmem:[%s2058_s9 + $0x30] sm:$0xff]  ;;  %v772_v56 = vld [vmem:[%s2060_s8 + $0x18] sm:$0xff] }
  0x45   : > { %1613 = vmatpush3.msra.mxu1 %v781_v38  ;;  %1556 = vmatprep.subr.mxu0 %v613_v41  ;;  %v606_v57 = vld [vmem:[%s2058_s9 + $0x28] sm:$0xff]  ;;  %v771_v58 = vld [vmem:[%s2060_s8 + $0x10] sm:$0xff]  ;;  %v605_v59 = vld [vmem:[%s2058_s9 + $0x20] sm:$0xff] }
  0x46   : > { %1614 = vmatprep.subr.mxu1 %v780_v40  ;;  %1557 = vmatpush3.msra.mxu0 %v613_v41  ;;  %v770_v60 = vld [vmem:[%s2060_s8 + $0x8] sm:$0xff]  ;;  %v604_v61 = vld [vmem:[%s2058_s9 + $0x18] sm:$0xff]  ;;  %v769_v62 = vld [vmem:[%s2060_s8] sm:$0xff] }
  0x47   : > { %1615 = vmatpush3.msra.mxu1 %v780_v40  ;;  %1558 = vmatprep.subr.mxu0 %v612_v43  ;;  %v603_v63 = vld [vmem:[%s2058_s9 + $0x10] sm:$0xff]  ;;  %v586_v0 = vld [vmem:[%s2307_s0 + $0x8] sm:$0xff]  ;;  %v601_v3 = vld [vmem:[%s2058_s9] sm:$0xff] }
  0x48   : > { %1616 = vmatprep.subr.mxu1 %v779_v42  ;;  %1559 = vmatpush3.msra.mxu0 %v612_v43  ;;  %v602_v1 = vld [vmem:[%s2058_s9 + $0x8] sm:$0xff]  ;;  %v587_v2 = vld [vmem:[%s2307_s0 + $0x10] sm:$0xff]  ;;  %v588_v4 = vld [vmem:[%s2307_s0 + $0x18] sm:$0xff] }
  0x49   : > { %1617 = vmatpush3.msra.mxu1 %v779_v42  ;;  %1560 = vmatprep.subr.mxu0 %v611_v45  ;;  %v589_v5 = vld [vmem:[%s2307_s0 + $0x20] sm:$0xff]  ;;  %v1064_v6 = vld [vmem:[%s2056_s23 + $0x78] sm:$0xff]  ;;  %v590_v7 = vld [vmem:[%s2307_s0 + $0x28] sm:$0xff] }
  0x4a   : > { %1618 = vmatprep.subr.mxu1 %v778_v44  ;;  %1561 = vmatpush3.msra.mxu0 %v611_v45  ;;  %v591_v8 = vld [vmem:[%s2307_s0 + $0x30] sm:$0xff]  ;;  %v592_v10 = vld [vmem:[%s2307_s0 + $0x38] sm:$0xff]  ;;  %v593_v11 = vld [vmem:[%s2307_s0 + $0x40] sm:$0xff] }
  0x4b   : > { %1619 = vmatpush3.msra.mxu1 %v778_v44  ;;  %1562 = vmatprep.subr.mxu0 %v610_v47  ;;  %v1063_v9 = vld [vmem:[%s2056_s23 + $0x70] sm:$0xff]  ;;  %v594_v12 = vld [vmem:[%s2307_s0 + $0x48] sm:$0xff]  ;;  %v596_v14 = vld [vmem:[%s2307_s0 + $0x58] sm:$0xff] }
  0x4c   : > { %1620 = vmatprep.subr.mxu1 %v777_v46  ;;  %1563 = vmatpush3.msra.mxu0 %v610_v47  ;;  %v595_v13 = vld [vmem:[%s2307_s0 + $0x50] sm:$0xff]  ;;  %v597_v15 = vld [vmem:[%s2307_s0 + $0x60] sm:$0xff]  ;;  %v598_v16 = vld [vmem:[%s2307_s0 + $0x68] sm:$0xff] }
  0x4d   : > { %1621 = vmatpush3.msra.mxu1 %v777_v46  ;;  %1638 = vmatprep.mubr.f32.mxu1 %v585_v49  ;;  %v599_v17 = vld [vmem:[%s2307_s0 + $0x70] sm:$0xff]  ;;  %v600_v18 = vld [vmem:[%s2307_s0 + $0x78] sm:$0xff]  ;;  %v1062_v19 = vld [vmem:[%s2056_s23 + $0x68] sm:$0xff] }
  0x4e   : > { %1622 = vmatprep.subr.mxu1 %v776_v48  ;;  %1564 = vmatprep.subr.mxu0 %v609_v51  ;;  %v1061_v20 = vld [vmem:[%s2056_s23 + $0x60] sm:$0xff]  ;;  %v1060_v21 = vld [vmem:[%s2056_s23 + $0x58] sm:$0xff]  ;;  %v1059_v22 = vld [vmem:[%s2056_s23 + $0x50] sm:$0xff] }
  0x4f   : > { %1623 = vmatpush3.msra.mxu1 %v776_v48  ;;  %1565 = vmatpush3.msra.mxu0 %v609_v51  ;;  %v1058_v23 = vld [vmem:[%s2056_s23 + $0x48] sm:$0xff]  ;;  %v1057_v24 = vld [vmem:[%s2056_s23 + $0x40] sm:$0xff]  ;;  %v1056_v25 = vld [vmem:[%s2056_s23 + $0x38] sm:$0xff] }
  0x50   : > { %1624 = vmatprep.subr.mxu1 %v775_v50  ;;  %1566 = vmatprep.subr.mxu0 %v608_v53  ;;  %v1055_v26 = vld [vmem:[%s2056_s23 + $0x30] sm:$0xff]  ;;  %v1054_v27 = vld [vmem:[%s2056_s23 + $0x28] sm:$0xff]  ;;  %v1053_v28 = vld [vmem:[%s2056_s23 + $0x20] sm:$0xff] }
  0x51   : > { %1625 = vmatpush3.msra.mxu1 %v775_v50  ;;  %1567 = vmatpush3.msra.mxu0 %v608_v53  ;;  %v1052_v29 = vld [vmem:[%s2056_s23 + $0x18] sm:$0xff]  ;;  %v1051_v30 = vld [vmem:[%s2056_s23 + $0x10] sm:$0xff]  ;;  %v1050_v31 = vld [vmem:[%s2056_s23 + $0x8] sm:$0xff] }
  0x52   : > { %1626 = vmatprep.subr.mxu1 %v774_v52  ;;  %1568 = vmatprep.subr.mxu0 %v607_v55  ;;  %v1049_v32 = vld [vmem:[%s2056_s23] sm:$0xff] }
  0x53   : > { %1627 = vmatpush3.msra.mxu1 %v774_v52  ;;  %1569 = vmatpush3.msra.mxu0 %v607_v55  ;;  %v2164_v33 = vld [vmem:[%s557_s20] ss:$0 sm:$0xff] }
  0x54   : > { %1628 = vmatprep.subr.mxu1 %v773_v54  ;;  %1570 = vmatprep.subr.mxu0 %v606_v57 }
  0x55   : > { %1629 = vmatpush3.msra.mxu1 %v773_v54  ;;  %1571 = vmatpush3.msra.mxu0 %v606_v57 }
  0x56   : > { %1630 = vmatprep.subr.mxu1 %v772_v56  ;;  %1572 = vmatprep.subr.mxu0 %v605_v59 }
  0x57   : > { %1631 = vmatpush3.msra.mxu1 %v772_v56  ;;  %1573 = vmatpush3.msra.mxu0 %v605_v59 }
  0x58   : > { %1632 = vmatprep.subr.mxu1 %v771_v58  ;;  %1574 = vmatprep.subr.mxu0 %v604_v61 }
  0x59   : > { %1633 = vmatpush3.msra.mxu1 %v771_v58  ;;  %1575 = vmatpush3.msra.mxu0 %v604_v61 }
  0x5a   : > { %1634 = vmatprep.subr.mxu1 %v770_v60  ;;  %1576 = vmatprep.subr.mxu0 %v603_v63 }
  0x5b   : > { %1635 = vmatpush3.msra.mxu1 %v770_v60  ;;  %1577 = vmatpush3.msra.mxu0 %v603_v63 }
  0x5c   : > { %1636 = vmatprep.subr.mxu1 %v769_v62  ;;  %1578 = vmatprep.subr.mxu0 %v602_v1 }
  0x5d   : > { %1637 = vmatpush3.msra.mxu1 %v769_v62  ;;  %1579 = vmatpush3.msra.mxu0 %v602_v1 }
  0x5e   : > { %1639 = vmatmul.mubr.f32.vlgmr.msra.gmra.mxu1 %v586_v0  ;;  %1580 = vmatprep.subr.mxu0 %v601_v3 }
  0x5f   : > { %1641 = vmatprep.mubr.f32.mxu1 %v587_v2  ;;  %1582 = vmatprep.mubr.f32.mxu0 %v585_v49 }
  0x60   : > { %1581 = vmatpush3.msra.mxu0 %v601_v3  ;;  %1718 = vmatprep.subr.mxu1 %v1064_v6 }
  0x61   : > { %1583 = vmatmul.mubr.f32.vlgmr.msra.gmra.mxu0 %v586_v0  ;;  %1662 = vmatprep.subr.mxu0 %v1064_v6 }
  0x62   : > { %1642 = vmatmul.mubr.f32.gmra.mxu1 %v588_v4  ;;  %1585 = vmatprep.mubr.f32.mxu0 %v587_v2 }
  0x63   : > { %1644 = vmatprep.mubr.f32.mxu1 %v589_v5  ;;  %1734 = vmatpush3.msra.mxu1 %v1064_v6 }
  0x64   : > { %1663 = vmatpush3.msra.mxu0 %v1064_v6  ;;  %1719 = vmatprep.subr.mxu1 %v1063_v9 }
  0x65   : > { %1586 = vmatmul.mubr.f32.gmra.mxu0 %v588_v4  ;;  %1664 = vmatprep.subr.mxu0 %v1063_v9 }
  0x66   : > { %1645 = vmatmul.mubr.f32.gmra.mxu1 %v590_v7  ;;  %1588 = vmatprep.mubr.f32.mxu0 %v589_v5 }
  0x67   : > { %1647 = vmatprep.mubr.f32.mxu1 %v591_v8  ;;  %1735 = vmatpush3.msra.mxu1 %v1063_v9 }
  0x68   : > { %1665 = vmatpush3.msra.mxu0 %v1063_v9  ;;  %1720 = vmatprep.subr.mxu1 %v1062_v19 }
  0x69   : > { %1589 = vmatmul.mubr.f32.gmra.mxu0 %v590_v7  ;;  %1666 = vmatprep.subr.mxu0 %v1062_v19  ;;  %v2203_v7 = vld [vmem:[%s554_s17] ss:$0 sm:$0xff] }
  0x6a   : > { %1648 = vmatmul.mubr.f32.gmra.mxu1 %v592_v10  ;;  %1591 = vmatprep.mubr.f32.mxu0 %v591_v8 }
  0x6b   : > { %1650 = vmatprep.mubr.f32.mxu1 %v593_v11  ;;  %1667 = vmatpush3.msra.mxu0 %v1062_v19 }
  0x6c   : > { %1736 = vmatpush3.msra.mxu1 %v1062_v19  ;;  %1668 = vmatprep.subr.mxu0 %v1061_v20 }
  0x6d   : > { %1592 = vmatmul.mubr.f32.gmra.mxu0 %v592_v10  ;;  %1721 = vmatprep.subr.mxu1 %v1061_v20 }
  0x6e   : > { %1651 = vmatmul.mubr.f32.gmra.mxu1 %v594_v12  ;;  %1594 = vmatprep.mubr.f32.mxu0 %v593_v11 }
  0x6f   : > { %1653 = vmatprep.mubr.f32.mxu1 %v595_v13  ;;  %1669 = vmatpush3.msra.mxu0 %v1061_v20 }
  0x70   : > { %1737 = vmatpush3.msra.mxu1 %v1061_v20  ;;  %1670 = vmatprep.subr.mxu0 %v1060_v21 }
  0x71   : > { %1595 = vmatmul.mubr.f32.gmra.mxu0 %v594_v12  ;;  %1722 = vmatprep.subr.mxu1 %v1060_v21 }
  0x72   : > { %1654 = vmatmul.mubr.f32.gmra.mxu1 %v596_v14  ;;  %1597 = vmatprep.mubr.f32.mxu0 %v595_v13 }
  0x73   : > { %1656 = vmatprep.mubr.f32.mxu1 %v597_v15  ;;  %1671 = vmatpush3.msra.mxu0 %v1060_v21 }
  0x74   : > { %1738 = vmatpush3.msra.mxu1 %v1060_v21  ;;  %1672 = vmatprep.subr.mxu0 %v1059_v22 }
  0x75   : > { %1598 = vmatmul.mubr.f32.gmra.mxu0 %v596_v14  ;;  %1723 = vmatprep.subr.mxu1 %v1059_v22 }
  0x76   : > { %1657 = vmatmul.mubr.f32.gmra.mxu1 %v598_v16  ;;  %1600 = vmatprep.mubr.f32.mxu0 %v597_v15 }
  0x77   : > { %1659 = vmatprep.mubr.f32.mxu1 %v599_v17  ;;  %1673 = vmatpush3.msra.mxu0 %v1059_v22 }
  0x78   : > { %1739 = vmatpush3.msra.mxu1 %v1059_v22  ;;  %1674 = vmatprep.subr.mxu0 %v1058_v23 }
  0x79   : > { %1601 = vmatmul.mubr.f32.gmra.mxu0 %v598_v16  ;;  %1724 = vmatprep.subr.mxu1 %v1058_v23 }
  0x7a   : > { %1660 = vmatmul.mubr.f32.gmra.mxu1 %v600_v18  ;;  %1603 = vmatprep.mubr.f32.mxu0 %v599_v17 }
  0x7b   : > { %1675 = vmatpush3.msra.mxu0 %v1058_v23  ;;  %1740 = vmatpush3.msra.mxu1 %v1058_v23 }
  0x7c   : > { %1676 = vmatprep.subr.mxu0 %v1057_v24  ;;  %1725 = vmatprep.subr.mxu1 %v1057_v24 }
  0x7d   : > { %1604 = vmatmul.mubr.f32.gmra.mxu0 %v600_v18  ;;  %1741 = vmatpush3.msra.mxu1 %v1057_v24 }
  0x7e   : > { %1677 = vmatpush3.msra.mxu0 %v1057_v24  ;;  %1726 = vmatprep.subr.mxu1 %v1056_v25 }
  0x7f   : > { %1678 = vmatprep.subr.mxu0 %v1056_v25  ;;  %1742 = vmatpush3.msra.mxu1 %v1056_v25 }
  0x80   : > { %1679 = vmatpush3.msra.mxu0 %v1056_v25  ;;  %1727 = vmatprep.subr.mxu1 %v1055_v26 }
  0x81   : > { %1680 = vmatprep.subr.mxu0 %v1055_v26  ;;  %1743 = vmatpush3.msra.mxu1 %v1055_v26 }
  0x82   : > { %1681 = vmatpush3.msra.mxu0 %v1055_v26  ;;  %1728 = vmatprep.subr.mxu1 %v1054_v27 }
  0x83   : > { %1682 = vmatprep.subr.mxu0 %v1054_v27  ;;  %1744 = vmatpush3.msra.mxu1 %v1054_v27 }
  0x84   : > { %1683 = vmatpush3.msra.mxu0 %v1054_v27  ;;  %1729 = vmatprep.subr.mxu1 %v1053_v28 }
  0x85   : > { %1684 = vmatprep.subr.mxu0 %v1053_v28  ;;  %1745 = vmatpush3.msra.mxu1 %v1053_v28 }
  0x86   : > { %1685 = vmatpush3.msra.mxu0 %v1053_v28  ;;  %1730 = vmatprep.subr.mxu1 %v1052_v29 }
  0x87   : > { %1686 = vmatprep.subr.mxu0 %v1052_v29  ;;  %1746 = vmatpush3.msra.mxu1 %v1052_v29 }
  0x88   : > { %1687 = vmatpush3.msra.mxu0 %v1052_v29  ;;  %1731 = vmatprep.subr.mxu1 %v1051_v30 }
  0x89   : > { %1688 = vmatprep.subr.mxu0 %v1051_v30  ;;  %1747 = vmatpush3.msra.mxu1 %v1051_v30 }
  0x8a   : > { %1689 = vmatpush3.msra.mxu0 %v1051_v30  ;;  %1732 = vmatprep.subr.mxu1 %v1050_v31 }
  0x8b   : > { %1690 = vmatprep.subr.mxu0 %v1050_v31  ;;  %1748 = vmatpush3.msra.mxu1 %v1050_v31 }
  0x8c   : > { %1691 = vmatpush3.msra.mxu0 %v1050_v31  ;;  %1733 = vmatprep.subr.mxu1 %v1049_v32 }
  0x8d   : > { %1692 = vmatprep.subr.mxu0 %v1049_v32  ;;  %1749 = vmatpush3.msra.mxu1 %v1049_v32 }
  0x8e   : > { %1693 = vmatpush3.msra.mxu0 %v1049_v32 }
 0x11e   : > { %v1640_v34 = vpop.f32.mrf.mxu1 }
 0x11f   : > { %v864_v35 = vadd.f32 %v1640_v34, %v2164_v33 }
 0x120   : > { %v858_v36 = vpop.f32.mrf.mxu1 }
 0x121   : > { %v954_v37 = vmul.f32 0.70710677, %v864_v35  ;;  %v859_v38 = vadd.f32 %v2164_v33, %v858_v36  ;;  %v1584_v40 = vpop.f32.mrf.mxu0  ;;  %v938_v10 = vmul.f32 0.5, %v864_v35 }
 0x122   : > { %v1643_v39 = vpop.f32.mrf.mxu1  ;;  %v696_v18 = vadd.f32 %v1584_v40, %v2203_v7 }
 0x123   : > { %1800 = verf.f32 %v954_v37  ;;  %v953_v41 = vmul.f32 0.70710677, %v859_v38  ;;  %v874_v42 = vadd.f32 %v1643_v39, %v2164_v33  ;;  %v690_v44 = vpop.f32.mrf.mxu0  ;;  %v937_v14 = vmul.f32 0.5, %v859_v38 }
 0x124   : > { %v868_v43 = vpop.f32.mrf.mxu1  ;;  %v691_v23 = vadd.f32 %v2203_v7, %v690_v44 }
 0x125   : > { %1802 = verf.f32 %v953_v41  ;;  %v956_v45 = vmul.f32 0.70710677, %v874_v42  ;;  %v869_v46 = vadd.f32 %v2164_v33, %v868_v43  ;;  %v1587_v48 = vpop.f32.mrf.mxu0  ;;  %v940_v22 = vmul.f32 0.5, %v874_v42 }
 0x126   : > { %v1646_v47 = vpop.f32.mrf.mxu1  ;;  %v706_v38 = vadd.f32 %v1587_v48, %v2203_v7 }
 0x127   : > { %1804 = verf.f32 %v956_v45  ;;  %v955_v49 = vmul.f32 0.70710677, %v869_v46  ;;  %v2171_v50 = vadd.f32 %v1646_v47, %v2164_v33  ;;  %v700_v52 = vpop.f32.mrf.mxu0  ;;  %v939_v27 = vmul.f32 0.5, %v869_v46 }
 0x128   : > { %v878_v51 = vpop.f32.mrf.mxu1  ;;  %v701_v42 = vadd.f32 %v2203_v7, %v700_v52 }
 0x129   : > { %1806 = verf.f32 %v955_v49  ;;  %v958_v53 = vmul.f32 0.70710677, %v2171_v50  ;;  %v2175_v54 = vadd.f32 %v2164_v33, %v878_v51  ;;  %v2177_v56 = vpop.f32.mrf.mxu0  ;;  %v942_v47 = vmul.f32 0.5, %v2171_v50 }
 0x12a   : > { %v1649_v55 = vpop.f32.mrf.mxu1  ;;  %v716_v52 = vadd.f32 %v2177_v56, %v2203_v7 }
 0x12b   : > { %1808 = verf.f32 %v958_v53  ;;  %v957_v57 = vmul.f32 0.70710677, %v2175_v54  ;;  %v2181_v58 = vadd.f32 %v1649_v55, %v2164_v33  ;;  %v2183_v60 = vpop.f32.mrf.mxu0  ;;  %v941_v49 = vmul.f32 0.5, %v2175_v54 }
 0x12c   : > { %v888_v59 = vpop.f32.mrf.mxu1 }
 0x12d   : > { %1810 = verf.f32 %v957_v57  ;;  %v960_v61 = vmul.f32 0.70710677, %v2181_v58  ;;  %v2187_v62 = vadd.f32 %v2164_v33, %v888_v59  ;;  %v2189_v0 = vpop.f32.mrf.mxu0 }
 0x12e   : > { %v1652_v63 = vpop.f32.mrf.mxu1 }
 0x12f   : > { %1812 = verf.f32 %v960_v61  ;;  %v959_v1 = vmul.f32 0.70710677, %v2187_v62  ;;  %v2193_v2 = vadd.f32 %v1652_v63, %v2164_v33  ;;  %v2195_v5 = vpop.f32.mrf.mxu0 }
 0x130   : > { %v1801_v3 = vpop.eup %1800  ;;  %v898_v4 = vpop.f32.mrf.mxu1 }
 0x131   : > { %1814 = verf.f32 %v959_v1  ;;  %v962_v6 = vmul.f32 0.70710677, %v2193_v2  ;;  %v986_v8 = vadd.f32 1.0, %v1801_v3  ;;  %v2206_v11 = vadd.f32 %v2164_v33, %v898_v4  ;;  %v2208_v13 = vpop.f32.mrf.mxu0 }
 0x132   : > { %v1803_v9 = vpop.eup %1802  ;;  %v1655_v12 = vpop.f32.mrf.mxu1  ;;  %v711_v3 = vadd.f32 %v2203_v7, %v2183_v60  ;;  %v943_v60 = vmul.f32 0.5, %v2187_v62 }
 0x133   : > { %1816 = verf.f32 %v962_v6  ;;  %v985_v15 = vadd.f32 1.0, %v1803_v9  ;;  %v2211_v16 = vadd.f32 %v1655_v12, %v2164_v33  ;;  %v1002_v19 = vmul.f32 %v986_v8, %v938_v10  ;;  %v2220_v31 = vpop.f32.mrf.mxu0 }
 0x134   : > { %v1805_v17 = vpop.eup %1804  ;;  %v961_v20 = vmul.f32 0.70710677, %v2206_v11  ;;  %v908_v21 = vpop.f32.mrf.mxu1  ;;  %v944_v12 = vmul.f32 0.5, %v2181_v58 }
 0x135   : > { %v1001_v24 = vmul.f32 %v985_v15, %v937_v14  ;;  %v964_v25 = vmul.f32 0.70710677, %v2211_v16  ;;  %v988_v28 = vadd.f32 1.0, %v1805_v17  ;;  %v2218_v29 = vadd.f32 %v2164_v33, %v908_v21  ;;  %v1599_v53 = vpop.f32.mrf.mxu0 }
 0x136   : > { %v1807_v26 = vpop.eup %1806  ;;  %1818 = verf.f32 %v961_v20  ;;  %v1658_v30 = vpop.f32.mrf.mxu1  ;;  %v1018_v37 = vmul.f32 %v1002_v19, %v696_v18 }
 0x137   : > { %v1017_v32 = vmul.f32 %v1001_v24, %v691_v23  ;;  %1820 = verf.f32 %v964_v25  ;;  %v987_v34 = vadd.f32 1.0, %v1807_v26  ;;  %v2223_v35 = vadd.f32 %v1658_v30, %v2164_v33  ;;  %v740_v10 = vpop.f32.mrf.mxu0 }
 0x138   : > { %v1809_v36 = vpop.eup %1808  ;;  %v1004_v39 = vmul.f32 %v988_v28, %v940_v22  ;;  %v963_v40 = vmul.f32 0.70710677, %v2218_v29  ;;  %v918_v41 = vpop.f32.mrf.mxu1  ;;  %v721_v22 = vadd.f32 %v2203_v7, %v2195_v5  ;;  %v946_v25 = vmul.f32 0.5, %v2193_v2 }
 0x139   : > { %v1003_v43 = vmul.f32 %v987_v34, %v939_v27  ;;  %v966_v44 = vmul.f32 0.70710677, %v2223_v35  ;;  %v990_v45 = vadd.f32 1.0, %v1809_v36  ;;  %1694 = vmatprep.mubr.f32.mxu0 %v1017_v32  ;;  %v2232_v51 = vadd.f32 %v2164_v33, %v918_v41  ;;  %v1602_v23 = vpop.f32.mrf.mxu0 }
 0x13a   : > { %v1811_v46 = vpop.eup %1810  ;;  %1822 = verf.f32 %v963_v40  ;;  %v1661_v48 = vpop.f32.mrf.mxu1  ;;  %1695 = vmatmul.mubr.f32.vlgmr.msra.gmra.mxu0 %v1018_v37  ;;  %v1020_v61 = vmul.f32 %v1004_v39, %v706_v38  ;;  %v945_v26 = vmul.f32 0.5, %v2206_v11  ;;  %v731_v5 = vadd.f32 %v2203_v7, %v2220_v31 }
 0x13b   : > { %v1019_v55 = vmul.f32 %v1003_v43, %v701_v42  ;;  %1824 = verf.f32 %v966_v44  ;;  %v989_v57 = vadd.f32 1.0, %v1811_v46  ;;  %v1006_v63 = vmul.f32 %v990_v45, %v942_v47  ;;  %v750_v37 = vpop.f32.mrf.mxu0 }
 0x13c   : > { %v1813_v59 = vpop.eup %1812  ;;  %v965_v50 = vmul.f32 0.70710677, %v2232_v51  ;;  %v2238_v54 = vadd.f32 %v1661_v48, %v2164_v33  ;;  %v928_v1 = vpop.f32.mrf.mxu1  ;;  %v948_v2 = vmul.f32 0.5, %v2211_v16  ;;  %v947_v11 = vmul.f32 0.5, %v2218_v29 }
 0x13d   : > { %v1005_v4 = vmul.f32 %v989_v57, %v941_v49  ;;  %v992_v6 = vadd.f32 1.0, %v1813_v59  ;;  %v2243_v8 = vadd.f32 %v2164_v33, %v928_v1  ;;  %1697 = vmatprep.mubr.f32.mxu0 %v1019_v55  ;;  %v1022_v18 = vmul.f32 %v1006_v63, %v716_v52  ;;  %v1605_v46 = vpop.f32.mrf.mxu0 }
 0x13e   : > { %v1815_v56 = vpop.eup %1814  ;;  %1826 = verf.f32 %v965_v50  ;;  %v968_v9 = vmul.f32 0.70710677, %v2238_v54  ;;  %1698 = vmatmul.mubr.f32.gmra.mxu0 %v1020_v61  ;;  %v726_v33 = vadd.f32 %v2189_v0, %v2203_v7  ;;  %v736_v0 = vadd.f32 %v2208_v13, %v2203_v7 }
 0x13f   : > { %v1021_v14 = vmul.f32 %v1005_v4, %v711_v3  ;;  %v967_v15 = vmul.f32 0.70710677, %v2243_v8  ;;  %v991_v19 = vadd.f32 1.0, %v1815_v56  ;;  %v1008_v20 = vmul.f32 %v992_v6, %v944_v12  ;;  %v760_v1 = vpop.f32.mrf.mxu0 }
 0x140   : > { %v1817_v17 = vpop.eup %1816  ;;  %1828 = verf.f32 %v968_v9  ;;  %v746_v13 = vadd.f32 %v1599_v53, %v2203_v7  ;;  %v741_v45 = vadd.f32 %v2203_v7, %v740_v10  ;;  %v950_v49 = vmul.f32 0.5, %v2223_v35 }
 0x141   : > { %1830 = verf.f32 %v967_v15  ;;  %v994_v21 = vadd.f32 1.0, %v1817_v17  ;;  %1700 = vmatprep.mubr.f32.mxu0 %v1021_v14  ;;  %v1007_v58 = vmul.f32 %v991_v19, %v943_v60  ;;  %v1024_v30 = vmul.f32 %v1008_v20, %v726_v33  ;;  %v1034_v17 = vld [vmem:[#allocation2] sm:$0xff]  ;;  %v1033_v60 = vld [vmem:[#allocation2 + $0x30] sm:$0xff]  ;;  %v1036_v19 = vld [vmem:[#allocation2 + $0x18] sm:$0xff] }
 0x142   : > { %1701 = vmatmul.mubr.f32.gmra.mxu0 %v1022_v18  ;;  %v949_v16 = vmul.f32 0.5, %v2232_v51  ;;  %v756_v57 = vadd.f32 %v1602_v23, %v2203_v7  ;;  %v751_v61 = vadd.f32 %v2203_v7, %v750_v37  ;;  %v952_v3 = vmul.f32 0.5, %v2238_v54 }
 0x143   : > { %v1819_v24 = vpop.eup %1818  ;;  %v1023_v27 = vmul.f32 %v1007_v58, %v721_v22  ;;  %v1010_v32 = vmul.f32 %v994_v21, %v946_v25  ;;  %v951_v35 = vmul.f32 0.5, %v2243_v8  ;;  %v766_v6 = vadd.f32 %v1605_v46, %v2203_v7  ;;  %v1035_v21 = vld [vmem:[#allocation2 + $0x58] sm:$0xff]  ;;  %v1038_v58 = vld [vmem:[#allocation2 + $0x68] sm:$0xff]  ;;  %v1037_v25 = vld [vmem:[#allocation2 + $0x50] sm:$0xff] }
 0x144   : > { %v1821_v62 = vpop.eup %1820  ;;  %v993_v28 = vadd.f32 1.0, %v1819_v24  ;;  %v761_v10 = vadd.f32 %v2203_v7, %v760_v1  ;;  %v1045_v46 = vld [vmem:[#allocation2 + $0x60] sm:$0xff] }
 0x145   : > { %v996_v34 = vadd.f32 1.0, %v1821_v62  ;;  %1703 = vmatprep.mubr.f32.mxu0 %v1023_v27  ;;  %v1026_v42 = vmul.f32 %v1010_v32, %v736_v0  ;;  %v1039_v0 = vld [vmem:[#allocation2 + $0x8] sm:$0xff] }
 0x146   : > { %v1009_v36 = vmul.f32 %v993_v28, %v945_v26  ;;  %1704 = vmatmul.mubr.f32.gmra.mxu0 %v1024_v30  ;;  %v1040_v28 = vld [vmem:[#allocation2 + $0x48] sm:$0xff] }
 0x147   : > { %v1823_v38 = vpop.eup %1822  ;;  %v1012_v43 = vmul.f32 %v996_v34, %v948_v2 }
 0x148   : > { %v1825_v39 = vpop.eup %1824  ;;  %v1025_v40 = vmul.f32 %v1009_v36, %v731_v5  ;;  %v995_v41 = vadd.f32 1.0, %v1823_v38  ;;  %v1042_v5 = vld [vmem:[#allocation2 + $0x20] sm:$0xff] }
 0x149   : > { %v998_v44 = vadd.f32 1.0, %v1825_v39  ;;  %v1028_v52 = vmul.f32 %v1012_v43, %v746_v13  ;;  %v1041_v38 = vld [vmem:[#allocation2 + $0x40] sm:$0xff] }
 0x14a   : > { %v1011_v31 = vmul.f32 %v995_v41, %v947_v11  ;;  %1706 = vmatprep.mubr.f32.mxu1 %v1025_v40  ;;  %v1044_v11 = vld [vmem:[#allocation2 + $0x38] sm:$0xff] }
 0x14b   : > { %v1827_v47 = vpop.eup %1826  ;;  %1707 = vmatmul.mubr.f32.vlgmr.msra.gmra.mxu1 %v1026_v42  ;;  %v1014_v53 = vmul.f32 %v998_v44, %v950_v49  ;;  %v1043_v42 = vld [vmem:[#allocation2 + $0x10] sm:$0xff] }
 0x14c   : > { %v1027_v48 = vmul.f32 %v1011_v31, %v741_v45  ;;  %v997_v29 = vadd.f32 1.0, %v1827_v47  ;;  %v1046_v44 = vld [vmem:[#allocation2 + $0x70] sm:$0xff] }
 0x14d   : > { %v1829_v55 = vpop.eup %1828  ;;  %v1030_v56 = vmul.f32 %v1014_v53, %v756_v57 }
 0x14e   : > { %v1831_v59 = vpop.eup %1830  ;;  %v1013_v63 = vmul.f32 %v997_v29, %v949_v16  ;;  %v1000_v50 = vadd.f32 1.0, %v1829_v55  ;;  %1709 = vmatprep.mubr.f32.mxu1 %v1027_v48  ;;  %v1048_v16 = vld [vmem:[#allocation2 + $0x28] sm:$0xff]  ;;  %v1047_v55 = vld [vmem:[#allocation2 + $0x78] sm:$0xff] }
 0x14f   : > { %v999_v4 = vadd.f32 1.0, %v1831_v59  ;;  %1710 = vmatmul.mubr.f32.gmra.mxu1 %v1028_v52 }
 0x150   : > { %v1029_v51 = vmul.f32 %v1013_v63, %v751_v61  ;;  %v1016_v9 = vmul.f32 %v1000_v50, %v952_v3 }
 0x151   : > { %v1015_v12 = vmul.f32 %v999_v4, %v951_v35 }
 0x152   : > { %1712 = vmatprep.mubr.f32.mxu1 %v1029_v51  ;;  %v1032_v15 = vmul.f32 %v1016_v9, %v766_v6 }
 0x153   : > { %v1031_v14 = vmul.f32 %v1015_v12, %v761_v10  ;;  %1713 = vmatmul.mubr.f32.gmra.mxu1 %v1030_v56 }
 0x155   : > { %1715 = vmatprep.mubr.f32.mxu1 %v1031_v14 }
 0x157   : > { %1716 = vmatmul.mubr.f32.gmra.mxu1 %v1032_v15 }
 0x1fa   : > { %v1696_v54 = vpop.f32.mrf.mxu0 }
 0x1fb   : > { %v1211_v8 = vadd.f32 %v1696_v54, %v1034_v17 }
 0x1fc   : > { %v1131_v18 = vpop.f32.mrf.mxu0 }
 0x1fd   : > { %1227 = vst [vmem:[#allocation2] sm:$0xff] %v1211_v8  ;;  %v1210_v33 = vadd.f32 %v1131_v18, %v1033_v60 }
 0x1fe   : > { %v1699_v20 = vpop.f32.mrf.mxu0 }
 0x1ff   : > { %1226 = vst [vmem:[#allocation2 + $0x30] sm:$0xff] %v1210_v33  ;;  %v1213_v22 = vadd.f32 %v1699_v20, %v1036_v19 }
 0x200   : > { %v1141_v7 = vpop.f32.mrf.mxu0 }
 0x201   : > { %1229 = vst [vmem:[#allocation2 + $0x18] sm:$0xff] %v1213_v22  ;;  %v1212_v23 = vadd.f32 %v1141_v7, %v1035_v21 }
 0x202   : > { %v1702_v24 = vpop.f32.mrf.mxu0 }
 0x203   : > { %1228 = vst [vmem:[#allocation2 + $0x58] sm:$0xff] %v1212_v23  ;;  %v1215_v62 = vadd.f32 %v1702_v24, %v1038_v58 }
 0x204   : > { %v1151_v26 = vpop.f32.mrf.mxu0 }
 0x205   : > { %1231 = vst [vmem:[#allocation2 + $0x68] sm:$0xff] %v1215_v62  ;;  %v1214_v27 = vadd.f32 %v1151_v26, %v1037_v25 }
 0x206   : > { %v1705_v30 = vpop.f32.mrf.mxu0 }
 0x207   : > { %1230 = vst [vmem:[#allocation2 + $0x50] sm:$0xff] %v1214_v27  ;;  %v1217_v32 = vadd.f32 %v1705_v30, %v1040_v28 }
 0x208   : > { %v1161_v34 = vpop.f32.mrf.mxu0 }
 0x209   : > { %1233 = vst [vmem:[#allocation2 + $0x48] sm:$0xff] %v1217_v32  ;;  %v1216_v36 = vadd.f32 %v1161_v34, %v1039_v0 }
 0x20b   : > { %v1708_v37 = vpop.f32.mrf.mxu1  ;;  %1232 = vst [vmem:[#allocation2 + $0x8] sm:$0xff] %v1216_v36 }
 0x20c   : > { %v1219_v2 = vadd.f32 %v1708_v37, %v1042_v5 }
 0x20d   : > { %v1171_v39 = vpop.f32.mrf.mxu1 }
 0x20e   : > { %1235 = vst [vmem:[#allocation2 + $0x20] sm:$0xff] %v1219_v2  ;;  %v1218_v40 = vadd.f32 %v1171_v39, %v1041_v38 }
 0x20f   : > { %v1711_v41 = vpop.f32.mrf.mxu1 }
 0x210   : > { %1234 = vst [vmem:[#allocation2 + $0x40] sm:$0xff] %v1218_v40  ;;  %v1221_v13 = vadd.f32 %v1711_v41, %v1044_v11 }
 0x211   : > { %v1181_v43 = vpop.f32.mrf.mxu1 }
 0x212   : > { %1237 = vst [vmem:[#allocation2 + $0x38] sm:$0xff] %v1221_v13  ;;  %v1220_v45 = vadd.f32 %v1181_v43, %v1043_v42 }
 0x213   : > { %v1714_v31 = vpop.f32.mrf.mxu1 }
 0x214   : > { %1236 = vst [vmem:[#allocation2 + $0x10] sm:$0xff] %v1220_v45  ;;  %v1223_v47 = vadd.f32 %v1714_v31, %v1046_v44 }
 0x215   : > { %v1191_v49 = vpop.f32.mrf.mxu1 }
 0x216   : > { %1239 = vst [vmem:[#allocation2 + $0x70] sm:$0xff] %v1223_v47  ;;  %v1222_v48 = vadd.f32 %v1191_v49, %v1045_v46 }
 0x217   : > { %v1717_v29 = vpop.f32.mrf.mxu1 }
 0x218   : > { %1238 = vst [vmem:[#allocation2 + $0x60] sm:$0xff] %v1222_v48  ;;  %v1225_v52 = vadd.f32 %v1717_v29, %v1048_v16  ;;  %1245 = sbr.rel (%p1448_p12) target bundleno = 552 (0x228), region = 132 }
 0x219   : > { %v1201_v57 = vpop.f32.mrf.mxu1 }
 0x21a   : > { %1241 = vst [vmem:[#allocation2 + $0x28] sm:$0xff] %v1225_v52  ;;  %v1224_v53 = vadd.f32 %v1201_v57, %v1047_v55 }
 0x21c   : > { %1240 = vst [vmem:[#allocation2 + $0x78] sm:$0xff] %v1224_v53 }
 0x21d   : > { %v1246_v59 = vld [vmem:[#allocation2 + $0x30] sm:$0xff]  ;;  %v1449_v61 = vld [vmem:[%s2313_s6] ss:$0 sm:$0xff]  ;;  %v1248_v3 = vld [vmem:[#allocation2 + $0x58] sm:$0xff] }
 0x21e   : > { %v1247_v63 = vld [vmem:[#allocation2] sm:$0xff]  ;;  %v1269_v50 = vadd.f32 %v1449_v61, %v1246_v59  ;;  %v1249_v35 = vld [vmem:[#allocation2 + $0x18] sm:$0xff]  ;;  %v1250_v4 = vld [vmem:[#allocation2 + $0x50] sm:$0xff]  ;;  %v1271_v51 = vadd.f32 %v1449_v61, %v1248_v3 }
 0x21f   : > { %v1270_v1 = vadd.f32 %v1449_v61, %v1247_v63  ;;  %v1272_v6 = vadd.f32 %v1449_v61, %v1249_v35  ;;  %v1273_v56 = vadd.f32 %v1449_v61, %v1250_v4  ;;  %v1251_v9 = vld [vmem:[#allocation2 + $0x68] sm:$0xff]  ;;  %v1254_v54 = vld [vmem:[#allocation2 + $0x40] sm:$0xff]  ;;  %v1256_v8 = vld [vmem:[#allocation2 + $0x10] sm:$0xff] }
 0x220   : > { %v1252_v10 = vld [vmem:[#allocation2 + $0x8] sm:$0xff]  ;;  %1285 = vst [vmem:[#allocation5] sm:$0xff] %v1269_v50  ;;  %v1274_v14 = vadd.f32 %v1449_v61, %v1251_v9  ;;  %v1255_v60 = vld [vmem:[#allocation2 + $0x20] sm:$0xff]  ;;  %1287 = vst [vmem:[#allocation5 + $0x10] sm:$0xff] %v1271_v51  ;;  %v1277_v18 = vadd.f32 %v1449_v61, %v1254_v54  ;;  %v1279_v33 = vadd.f32 %v1449_v61, %v1256_v8 }
 0x221   : > { %v1253_v12 = vld [vmem:[#allocation2 + $0x48] sm:$0xff]  ;;  %1286 = vst [vmem:[#allocation5 + $0x8] sm:$0xff] %v1270_v1  ;;  %v1275_v15 = vadd.f32 %v1449_v61, %v1252_v10  ;;  %1288 = vst [vmem:[#allocation5 + $0x18] sm:$0xff] %v1272_v6  ;;  %v1278_v19 = vadd.f32 %v1449_v61, %v1255_v60  ;;  %v1257_v20 = vld [vmem:[#allocation2 + $0x38] sm:$0xff] }
 0x222   : > { %v1276_v17 = vadd.f32 %v1449_v61, %v1253_v12  ;;  %1289 = vst [vmem:[#allocation5 + $0x20] sm:$0xff] %v1273_v56  ;;  %v1258_v21 = vld [vmem:[#allocation2 + $0x60] sm:$0xff]  ;;  %v1259_v22 = vld [vmem:[#allocation2 + $0x70] sm:$0xff]  ;;  %1290 = vst [vmem:[#allocation5 + $0x28] sm:$0xff] %v1274_v14  ;;  %v1280_v7 = vadd.f32 %v1449_v61, %v1257_v20 }
 0x223   : > { %1291 = vst [vmem:[#allocation5 + $0x30] sm:$0xff] %v1275_v15  ;;  %v1281_v58 = vadd.f32 %v1449_v61, %v1258_v21  ;;  %v1282_v23 = vadd.f32 %v1449_v61, %v1259_v22  ;;  %v1260_v24 = vld [vmem:[#allocation2 + $0x78] sm:$0xff]  ;;  %v1261_v25 = vld [vmem:[#allocation2 + $0x28] sm:$0xff]  ;;  %1293 = vst [vmem:[#allocation5 + $0x40] sm:$0xff] %v1277_v18 }
 0x224   : > { %1292 = vst [vmem:[#allocation5 + $0x38] sm:$0xff] %v1276_v17  ;;  %1294 = vst [vmem:[#allocation5 + $0x48] sm:$0xff] %v1278_v19  ;;  %v1283_v62 = vadd.f32 %v1449_v61, %v1260_v24  ;;  %v1284_v26 = vadd.f32 %v1449_v61, %v1261_v25 }
 0x225   : > { %1295 = vst [vmem:[#allocation5 + $0x50] sm:$0xff] %v1279_v33  ;;  %1296 = vst [vmem:[#allocation5 + $0x58] sm:$0xff] %v1280_v7 }
 0x226   : > { %1297 = vst [vmem:[#allocation5 + $0x60] sm:$0xff] %v1281_v58  ;;  %1298 = vst [vmem:[#allocation5 + $0x68] sm:$0xff] %v1282_v23 }
 0x227   : > { %1299 = vst [vmem:[#allocation5 + $0x70] sm:$0xff] %v1283_v62  ;;  %1300 = vst [vmem:[#allocation5 + $0x78] sm:$0xff] %v1284_v26 }
 0x228 PF: > { %p2277_p13 = scmp.eq.s32.totalorder %s1432_s29, 1  ;;  %s1901_s9 = smov [#allocation5]  }
 0x229   : > { %s1310_s8 = sshll.u32 %s1901_s9, 4  ;;  %s1311_s8 = int_to_ptr.vmem [resolvable:$true] %s1310_s8 }
 0x22a   : > { %s1832_s10 = scalar_lea.vmem %s1311_s8, 2048  ;;  %p1839_p3 = scmp.lt.s32.totalorder %s1311_s8, %s1311_s8 }
 0x22b   : > { %p1833_p0 = scmp.ne.s32.totalorder %s1311_s8, %s1832_s10  ;;  %p1840_p4 = scmp.lt.s32.totalorder %s1832_s10, %s1832_s10 }
 0x22d   : > { %p1834_p1 = pnand %p1833_p0, %p2277_p13  ;;  %p1841_p5 = por %p1840_p4, %p1839_p3 }
 0x22f   : > { %p1835_p2 = pneg %p1834_p1 }
 0x231   : > { %p1842_p6 = pnand %p1841_p5, %p1835_p2 }
 0x233   : > { %1845 = shalt.err (!%p1842_p6)
}
 0x234   : > { %s1902_s12 = smov 128   ;;  %s1903_s29 = smov 8  }
 0x235   : > { %1751 = dma.vmem_to_hbm [thread:$0]  (%p2277_p13), %s1311_s8, 2048, %s2314_s7, [#allocation6], %s1902_s12, %s1902_s12, %s1903_s29  }
 0x236   : > { %1877 = dma.done.wait (%p2277_p13), [#allocation6], 2048  }
 0x237   : > { %1879 = vsyncadd (%p2277_p13), [#allocation6], 4294965248 }
 0x238 PF: > { %s18_s28 = sadd.s32 1, %s1898_s28   ;;  %s2317_s24 = smov %s1886_s25 }
 0x239   : > { %p15_p7 = scmp.ge.s32.totalorder %s18_s28, 4   ;;  %s2318_s25 = smov %s1984_s11 }
 0x23a   : > { %s2319_s26 = smov %s1894_s27  ;;  %s2320_s27 = smov %s2322_s30 }
 0x23b   :  { %17 = sbr.rel (!%p15_p7) target bundleno = 3 (0x3), region = 185 }
 0x240   :  { %1326 = vsyncpa [#allocation6], 1 }
 0x241   :  { %1328 = vsyncpa [#allocation6 + $0x1], 1 }

</bundles_post_ra>
